<compile_context>
chip_gen: v7x
topology: tpu7x:2x2x1
jax: 0.10.0
libtpu: 0.0.40
codegen_flags: <defaults>
</compile_context>

<pallas_src>
import functools

import jax
import jax.numpy as jnp
from jax.experimental import pallas as pl
from jax.experimental.pallas import tpu as pltpu

_LANE = 128
_SUBLANE = 16          # bf16-packed sublane alignment for batch tiles


def _round_up(n, m):
    return ((n + m - 1) // m) * m


def _vmem_capacity_bytes():
    """Physical VMEM per TensorCore; conservative 64 MiB (v7x) fallback."""
    try:
        cap = int(getattr(pltpu.get_tpu_info(), "vmem_capacity_bytes"))
        if cap > 0:
            return cap
    except Exception:
        pass
    return 64 << 20


def _encoder_kernel(num_hidden, conditional, d_in, *refs):
    """Fused MLP encoder kernel.

    refs layout (conditional):
      [x, k, W0, b0, (W_i, b_i)*..., W_head, b_head, out, xk_scratch]
    refs layout (unconditional):
      [x, W0, b0, (W_i, b_i)*..., W_head, b_head, out]

    Matmuls use bf16 operands on the MXU with f32 accumulation; bias add and
    ReLU stay in f32 on the VPU.  Activations are intentionally re-quantized
    to bf16 between layers (precision tradeoff vs. PyTorch f32).
    """
    if conditional:
        x_ref, k_ref = refs[0], refs[1]
        out_ref = refs[-2]
        xk_ref = refs[-1]                      # VMEM scratch: [x | k]
        params = refs[2:-2]
        # Single MXU push for layer 0: build the concatenated input in VMEM
        # and multiply by the original unsplit W0.
        xk_ref[:, :d_in] = x_ref[...]
        xk_ref[:, d_in:] = k_ref[...]
        xin = xk_ref[...]
    else:
        x_ref = refs[0]
        out_ref = refs[-1]
        params = refs[1:-1]
        xin = x_ref[...]

    w0_ref, b0_ref = params[0], params[1]
    h = jnp.dot(xin, w0_ref[...], preferred_element_type=jnp.float32) + b0_ref[...]
    h = jnp.maximum(h, 0.0)                    # ReLU in f32

    pos = 2
    for _ in range(num_hidden - 1):
        w_ref, b_ref = params[pos], params[pos + 1]
        pos += 2
        h = jnp.dot(h.astype(jnp.bfloat16), w_ref[...],
                    preferred_element_type=jnp.float32) + b_ref[...]
        h = jnp.maximum(h, 0.0)

    wh_ref, bh_ref = params[pos], params[pos + 1]   # fused [means | log_var]
    out = jnp.dot(h.astype(jnp.bfloat16), wh_ref[...],
                  preferred_element_type=jnp.float32) + bh_ref[...]
    out_ref[...] = out.astype(out_ref.dtype)        # bf16 lane-dense writeback


def _init_linear(key, in_size, out_size):
    """Deterministic PyTorch-style Linear init: U(-1/sqrt(in), 1/sqrt(in))."""
    kw, kb = jax.random.split(key)
    bound = 1.0 / (in_size ** 0.5)
    w = jax.random.uniform(kw, (in_size, out_size), jnp.float32, -bound, bound)
    b = jax.random.uniform(kb, (out_size,), jnp.float32, -bound, bound)
    return w, b


class EncoderPallas:
    def __init__(self, layer_sizes, latent_size, conditional, num_labels, key):
        layer_sizes = list(layer_sizes)
        self.conditional = bool(conditional)
        self.num_labels = int(num_labels) if self.conditional else 0
        self.latent_size = int(latent_size)
        self.in_features = int(layer_sizes[0])
        if self.conditional:
            layer_sizes[0] += self.num_labels

        self.num_hidden = len(layer_sizes) - 1
        assert self.num_hidden >= 1, "need at least one hidden Linear layer"
        keys = jax.random.split(key, self.num_hidden + 2)

        # ---- raw (un-padded, f32) params: kept for the pure-JAX reference ----
        self.raw_hidden = []
        for i, (isz, osz) in enumerate(zip(layer_sizes[:-1], layer_sizes[1:])):
            self.raw_hidden.append(_init_linear(keys[i], isz, osz))
        self.raw_means = _init_linear(keys[-2], layer_sizes[-1], latent_size)
        self.raw_logvar = _init_linear(keys[-1], layer_sizes[-1], latent_size)

        # ---- kernel params: zero-padded to 128-lane widths, bf16 weights ----
        padded = []
        for i, (w, b) in enumerate(self.raw_hidden):
            in_true, out_true = w.shape
            in_pad = in_true if i == 0 else _round_up(in_true, _LANE)
            out_pad = _round_up(out_true, _LANE)
            wp = jnp.zeros((in_pad, out_pad), jnp.float32).at[:in_true, :out_true].set(w)
            bp = jnp.zeros((1, out_pad), jnp.float32).at[0, :out_true].set(b)
            padded.append((wp.astype(jnp.bfloat16), bp))
        self.layer0 = padded[0]          # unsplit: kernel concatenates [x | k]
        self.rest_hidden = padded[1:]

        # Fused [means | log_var] head, padded to a lane-dense 128-wide output.
        h_true = layer_sizes[-1]
        h_pad = _round_up(h_true, _LANE)
        self.head_pad = _round_up(2 * self.latent_size, _LANE)
        wm, bm = self.raw_means
        wv, bv = self.raw_logvar
        wh = jnp.zeros((h_pad, self.head_pad), jnp.float32)
        wh = wh.at[:h_true, :self.latent_size].set(wm)
        wh = wh.at[:h_true, self.latent_size:2 * self.latent_size].set(wv)
        bh = jnp.zeros((1, self.head_pad), jnp.float32)
        bh = bh.at[0, :self.latent_size].set(bm)
        bh = bh.at[0, self.latent_size:2 * self.latent_size].set(bv)
        self.head_params = (wh.astype(jnp.bfloat16), bh)

    # ------------------------------------------------------------------ call
    def __call__(self, x, k=None):
        if self.conditional and k is None:
            raise ValueError("conditional encoder requires labels k")
        batch, d_in = x.shape
        assert d_in == self.in_features

        x_bf = x.astype(jnp.bfloat16)
        k_bf = k.astype(jnp.bfloat16) if self.conditional else None

        # ---- generation-aware budgets & batch tiling -----------------------
        vmem_cap = _vmem_capacity_bytes()
        usable_cap = int(0.85 * vmem_cap)
        max_tile = 512 if vmem_cap >= (96 << 20) else 256

        pad_b = _round_up(batch, _SUBLANE)
        if pad_b >= 2 * _SUBLANE:
            # >= 2 grid programs so the "parallel" batch axis can shard across
            # v7x's two TensorCores; tiles stay 16-row aligned.
            tb = min(max_tile, _round_up(pl.cdiv(pad_b, 2), _SUBLANE))
        else:
            tb = pad_b
        pad_b = _round_up(pad_b, tb)
        grid = (pad_b // tb,)

        if pad_b != batch:
            x_bf = jnp.pad(x_bf, ((0, pad_b - batch), (0, 0)))
            if self.conditional:
                k_bf = jnp.pad(k_bf, ((0, pad_b - batch), (0, 0)))

        # ---- VMEM accounting & cost estimate --------------------------------
        all_layers = [self.layer0] + self.rest_hidden + [self.head_params]
        weight_arrays = [w for (w, _) in all_layers]
        param_arrays = [a for pair in all_layers for a in pair]
        param_bytes = sum(int(a.size) * a.dtype.itemsize for a in param_arrays)

        tile_in_bytes = tb * d_in * 2 + (tb * self.num_labels * 2 if self.conditional else 0)
        tile_out_bytes = tb * self.head_pad * 2
        max_width = max(w.shape[1] for w in weight_arrays)
        work_bytes = 3 * tb * max_width * 4          # f32 activation temporaries

        resident_min = param_bytes + 2 * (tile_in_bytes + tile_out_bytes) + work_bytes
        if resident_min > usable_cap:
            # TODO(synk): add a weight-streaming (K/N-tiled) fallback for layers too large to keep VMEM-resident.
            raise NotImplementedError(
                "encoder params (%d B) exceed the per-core VMEM budget (%d B)"
                % (param_bytes, usable_cap))

        flops = sum(2 * pad_b * w.shape[0] * w.shape[1] for w in weight_arrays)
        act_bytes = (pad_b * d_in * 2
                     + (pad_b * self.num_labels * 2 if self.conditional else 0)
                     + pad_b * self.head_pad * 2)
        cost = pl.CostEstimate(flops=int(flops), transcendentals=0,
                               bytes_accessed=int(param_bytes + act_bytes))

        def run(buffered_weights):
            pipeline_mode = pl.Buffered(1) if buffered_weights else None

            def const_spec(a):
                if pipeline_mode is not None:
                    return pl.BlockSpec(a.shape, lambda i: (0, 0),
                                        pipeline_mode=pipeline_mode)
                return pl.BlockSpec(a.shape, lambda i: (0, 0))

            args = [x_bf]
            in_specs = [pl.BlockSpec((tb, d_in), lambda i: (i, 0))]
            if self.conditional:
                args.append(k_bf)
                in_specs.append(pl.BlockSpec((tb, self.num_labels), lambda i: (i, 0)))
            for w, b in all_layers:
                args += [w, b]
                in_specs += [const_spec(w), const_spec(b)]

            out_specs = pl.BlockSpec((tb, self.head_pad), lambda i: (i, 0))
            out_shape = jax.ShapeDtypeStruct((pad_b, self.head_pad), jnp.bfloat16)

            scratch_shapes = []
            if self.conditional:
                scratch_shapes.append(
                    pltpu.VMEM((tb, d_in + self.num_labels), jnp.bfloat16))

            weight_factor = 1 if buffered_weights else 2
            vmem_limit = int(min(
                max(weight_factor * param_bytes
                    + 2 * (tile_in_bytes + tile_out_bytes)
                    + work_bytes + (4 << 20),
                    16 << 20),
                usable_cap))

            kernel = functools.partial(_encoder_kernel, self.num_hidden,
                                       self.conditional, d_in)
            return pl.pallas_call(
                kernel,
                out_shape=out_shape,
                grid=grid,
                in_specs=in_specs,
                out_specs=out_specs,
                scratch_shapes=scratch_shapes,
                compiler_params=pltpu.CompilerParams(
                    dimension_semantics=("parallel",),
                    vmem_limit_bytes=vmem_limit),
                cost_estimate=cost,
            )(*args)

        try:
            out = jax.block_until_ready(run(True))
        except Exception:
            # Fallback if Buffered(1) resident-weight specs are unsupported.
            out = jax.block_until_ready(run(False))

        out = out[:batch]
        means = out[:, :self.latent_size].astype(jnp.float32)
        log_vars = out[:, self.latent_size:2 * self.latent_size].astype(jnp.float32)
        return means, log_vars


# ----------------------------------------------------------------- references
def _reference_forward_matched(model, x, k):
    """Pure-JAX reference using the SAME padded bf16 params / f32 accumulation
    and the same bf16 output writeback as the kernel."""
    if model.conditional:
        h = jnp.concatenate((x, k), axis=1).astype(jnp.bfloat16)
    else:
        h = x.astype(jnp.bfloat16)
    w0, b0 = model.layer0
    h = jnp.maximum(jnp.dot(h, w0, preferred_element_type=jnp.float32) + b0, 0.0)
    for w, b in model.rest_hidden:
        h = jnp.maximum(
            jnp.dot(h.astype(jnp.bfloat16), w, preferred_element_type=jnp.float32) + b,
            0.0)
    wh, bh = model.head_params
    out = jnp.dot(h.astype(jnp.bfloat16), wh, preferred_element_type=jnp.float32) + bh
    out = out.astype(jnp.bfloat16).astype(jnp.float32)
    return out[:, :model.latent_size], out[:, model.latent_size:2 * model.latent_size]


def _reference_forward_f32(model, x, k):
    """Un-padded full-f32 math (the original PyTorch semantics)."""
    h = jnp.concatenate((x, k), axis=1) if model.conditional else x
    for w, b in model.raw_hidden:
        h = jnp.maximum(h @ w + b, 0.0)
    means = h @ model.raw_means[0] + model.raw_means[1]
    log_vars = h @ model.raw_logvar[0] + model.raw_logvar[1]
    return means, log_vars


if __name__ == "__main__":
    key = jax.random.PRNGKey(0)
    k_params, k_x, k_lab = jax.random.split(key, 3)

    # Small config consistent with the module: conditional VAE encoder.
    layer_sizes = [16, 32]      # input feature dim 16, one hidden layer of 32
    latent_size = 8
    conditional = True
    num_labels = 4
    batch = 2

    model = EncoderPallas(layer_sizes, latent_size, conditional, num_labels, k_params)

    x = jax.random.normal(k_x, (batch, 16), jnp.float32)
    labels = jax.nn.one_hot(
        jax.random.randint(k_lab, (batch,), 0, num_labels), num_labels
    ).astype(jnp.float32)

    means, log_vars = model(x, labels)
    jax.block_until_ready((means, log_vars))

    assert means.shape == (batch, latent_size)
    assert log_vars.shape == (batch, latent_size)

    # Check vs. a JAX reference using identical bf16/padded params (tolerance
    # absorbs MXU-vs-XLA accumulation order under the bf16 output rounding).
    rm, rv = _reference_forward_matched(model, x, labels)
    assert jnp.allclose(means, rm, atol=2e-2, rtol=2e-2)
    assert jnp.allclose(log_vars, rv, atol=2e-2, rtol=2e-2)

    # Semantics check vs. the original full-f32 (PyTorch-equivalent) math;
    # tolerance absorbs the intentional bf16 operand/output rounding.
    fm, fv = _reference_forward_f32(model, x, labels)
    assert jnp.allclose(means, fm, atol=1e-1, rtol=1e-1)
    assert jnp.allclose(log_vars, fv, atol=1e-1, rtol=1e-1)

    print("KERNEL_OK")
</pallas_src>

<mosaic_0001>
module attributes {stable_mosaic.version = 11 : i64} {
  func.func @_encoder_kernel(%arg0: i32, %arg1: memref<16x16xbf16, #tpu.memory_space<vmem>>, %arg2: memref<16x4xbf16, #tpu.memory_space<vmem>>, %arg3: memref<20x128xbf16, #tpu.memory_space<vmem>>, %arg4: memref<1x128xf32, #tpu.memory_space<vmem>>, %arg5: memref<128x128xbf16, #tpu.memory_space<vmem>>, %arg6: memref<1x128xf32, #tpu.memory_space<vmem>>, %arg7: memref<16x128xbf16, #tpu.memory_space<vmem>>, %arg8: memref<16x20xbf16, #tpu.memory_space<vmem>>) attributes {dimension_semantics = [#tpu.dimension_semantics<parallel>], iteration_bounds = array<i64: 1>, scalar_prefetch = 0 : i64, scratch_operands = 1 : i64, tpu.core_type = #tpu.core_type<tc>, window_params = [{transform_indices = @transform_0, window_bounds = array<i64: 16, 16>}, {transform_indices = @transform_1, window_bounds = array<i64: 16, 4>}, {pipeline_mode = #tpu.pipeline_mode<synchronous>, transform_indices = @transform_2, window_bounds = array<i64: 20, 128>}, {pipeline_mode = #tpu.pipeline_mode<synchronous>, transform_indices = @transform_3, window_bounds = array<i64: 1, 128>}, {pipeline_mode = #tpu.pipeline_mode<synchronous>, transform_indices = @transform_4, window_bounds = array<i64: 128, 128>}, {pipeline_mode = #tpu.pipeline_mode<synchronous>, transform_indices = @transform_5, window_bounds = array<i64: 1, 128>}, {transform_indices = @transform_6, window_bounds = array<i64: 16, 128>}]} {
    %c0 = arith.constant 0 : index
    %c0_0 = arith.constant 0 : index
    %0 = vector.load %arg1[%c0, %c0_0] : memref<16x16xbf16, #tpu.memory_space<vmem>>, vector<16x16xbf16>
    %c0_1 = arith.constant 0 : index
    %c0_2 = arith.constant 0 : index
    %1 = vector.load %arg8[%c0_1, %c0_2] : memref<16x20xbf16, #tpu.memory_space<vmem>>, vector<16x16xbf16>
    tpu.vector_store %arg8[%c0_1, %c0_2], %0 {strides = array<i32>} : memref<16x20xbf16, #tpu.memory_space<vmem>>, vector<16x16xbf16>,
    %c0_3 = arith.constant 0 : index
    %c0_4 = arith.constant 0 : index
    %2 = vector.load %arg2[%c0_3, %c0_4] : memref<16x4xbf16, #tpu.memory_space<vmem>>, vector<16x4xbf16>
    %c0_5 = arith.constant 0 : index
    %c16 = arith.constant 16 : index
    %3 = vector.load %arg8[%c0_5, %c16] : memref<16x20xbf16, #tpu.memory_space<vmem>>, vector<16x4xbf16>
    tpu.vector_store %arg8[%c0_5, %c16], %2 {strides = array<i32>} : memref<16x20xbf16, #tpu.memory_space<vmem>>, vector<16x4xbf16>,
    %c0_6 = arith.constant 0 : index
    %c0_7 = arith.constant 0 : index
    %4 = vector.load %arg8[%c0_6, %c0_7] : memref<16x20xbf16, #tpu.memory_space<vmem>>, vector<16x20xbf16>
    %c0_8 = arith.constant 0 : index
    %c0_9 = arith.constant 0 : index
    %5 = vector.load %arg3[%c0_8, %c0_9] : memref<20x128xbf16, #tpu.memory_space<vmem>>, vector<20x128xbf16>
    %cst = arith.constant dense<0.000000e+00> : vector<16x128xf32>
    %6 = tpu.matmul %4, %5, %cst {dimension_numbers = #tpu.dot_dimension_numbers<[1], [0], [0], [1], [0, 0, 1, 1], [], []>} : vector<16x20xbf16>, vector<20x128xbf16>, vector<16x128xf32> -> vector<16x128xf32>
    %c0_10 = arith.constant 0 : index
    %c0_11 = arith.constant 0 : index
    %7 = vector.load %arg4[%c0_10, %c0_11] : memref<1x128xf32, #tpu.memory_space<vmem>>, vector<1x128xf32>
    %8 = vector.broadcast %7 : vector<1x128xf32> to vector<16x128xf32>
    %9 = arith.addf %6, %8 : vector<16x128xf32>
    %cst_12 = arith.constant 0.000000e+00 : f32
    %10 = vector.broadcast %cst_12 : f32 to vector<16x128xf32>
    %11 = arith.maximumf %9, %10 : vector<16x128xf32>
    %12 = arith.truncf %11 : vector<16x128xf32> to vector<16x128xbf16>
    %c0_13 = arith.constant 0 : index
    %c0_14 = arith.constant 0 : index
    %13 = vector.load %arg5[%c0_13, %c0_14] : memref<128x128xbf16, #tpu.memory_space<vmem>>, vector<128x128xbf16>
    %cst_15 = arith.constant dense<0.000000e+00> : vector<16x128xf32>
    %14 = tpu.matmul %12, %13, %cst_15 {dimension_numbers = #tpu.dot_dimension_numbers<[1], [0], [0], [1], [0, 0, 1, 1], [], []>} : vector<16x128xbf16>, vector<128x128xbf16>, vector<16x128xf32> -> vector<16x128xf32>
    %c0_16 = arith.constant 0 : index
    %c0_17 = arith.constant 0 : index
    %15 = vector.load %arg6[%c0_16, %c0_17] : memref<1x128xf32, #tpu.memory_space<vmem>>, vector<1x128xf32>
    %16 = vector.broadcast %15 : vector<1x128xf32> to vector<16x128xf32>
    %17 = arith.addf %14, %16 : vector<16x128xf32>
    %18 = arith.truncf %17 : vector<16x128xf32> to vector<16x128xbf16>
    %c0_18 = arith.constant 0 : index
    %c0_19 = arith.constant 0 : index
    %19 = vector.load %arg7[%c0_18, %c0_19] : memref<16x128xbf16, #tpu.memory_space<vmem>>, vector<16x128xbf16>
    tpu.vector_store %arg7[%c0_18, %c0_19], %18 {strides = array<i32>} : memref<16x128xbf16, #tpu.memory_space<vmem>>, vector<16x128xbf16>,
    return
  }
  func.func @transform_0(%arg0: i32) -> (i32, i32) {
    %c0_i32 = arith.constant 0 : i32
    %c0_i32_0 = arith.constant 0 : i32
    return %arg0, %c0_i32 : i32, i32
  }
  func.func @transform_1(%arg0: i32) -> (i32, i32) {
    %c0_i32 = arith.constant 0 : i32
    %c0_i32_0 = arith.constant 0 : i32
    return %arg0, %c0_i32 : i32, i32
  }
  func.func @transform_2(%arg0: i32) -> (i32, i32) {
    %c0_i32 = arith.constant 0 : i32
    %c0_i32_0 = arith.constant 0 : i32
    %c0_i32_1 = arith.constant 0 : i32
    return %c0_i32, %c0_i32_0 : i32, i32
  }
  func.func @transform_3(%arg0: i32) -> (i32, i32) {
    %c0_i32 = arith.constant 0 : i32
    %c0_i32_0 = arith.constant 0 : i32
    %c0_i32_1 = arith.constant 0 : i32
    return %c0_i32, %c0_i32_0 : i32, i32
  }
  func.func @transform_4(%arg0: i32) -> (i32, i32) {
    %c0_i32 = arith.constant 0 : i32
    %c0_i32_0 = arith.constant 0 : i32
    %c0_i32_1 = arith.constant 0 : i32
    return %c0_i32, %c0_i32_0 : i32, i32
  }
  func.func @transform_5(%arg0: i32) -> (i32, i32) {
    %c0_i32 = arith.constant 0 : i32
    %c0_i32_0 = arith.constant 0 : i32
    %c0_i32_1 = arith.constant 0 : i32
    return %c0_i32, %c0_i32_0 : i32, i32
  }
  func.func @transform_6(%arg0: i32) -> (i32, i32) {
    %c0_i32 = arith.constant 0 : i32
    %c0_i32_0 = arith.constant 0 : i32
    return %arg0, %c0_i32 : i32, i32
  }
}

module attributes {stable_mosaic.version = 11 : i64} {
  func.func @_encoder_kernel(%arg0: i32, %arg1: memref<16x16xbf16, #tpu.memory_space<vmem>>, %arg2: memref<16x4xbf16, #tpu.memory_space<vmem>>, %arg3: memref<20x128xbf16, #tpu.memory_space<vmem>>, %arg4: memref<1x128xf32, #tpu.memory_space<vmem>>, %arg5: memref<128x128xbf16, #tpu.memory_space<vmem>>, %arg6: memref<1x128xf32, #tpu.memory_space<vmem>>, %arg7: memref<16x128xbf16, #tpu.memory_space<vmem>>, %arg8: memref<16x20xbf16, #tpu.memory_space<vmem>>) attributes {dimension_semantics = [#tpu.dimension_semantics<parallel>], iteration_bounds = array<i64: 1>, scalar_prefetch = 0 : i64, scratch_operands = 1 : i64, tpu.core_type = #tpu.core_type<tc>, window_params = [{transform_indices = @transform_0, window_bounds = array<i64: 16, 16>}, {transform_indices = @transform_1, window_bounds = array<i64: 16, 4>}, {pipeline_mode = #tpu.pipeline_mode<synchronous>, transform_indices = @transform_2, window_bounds = array<i64: 20, 128>}, {pipeline_mode = #tpu.pipeline_mode<synchronous>, transform_indices = @transform_3, window_bounds = array<i64: 1, 128>}, {pipeline_mode = #tpu.pipeline_mode<synchronous>, transform_indices = @transform_4, window_bounds = array<i64: 128, 128>}, {pipeline_mode = #tpu.pipeline_mode<synchronous>, transform_indices = @transform_5, window_bounds = array<i64: 1, 128>}, {transform_indices = @transform_6, window_bounds = array<i64: 16, 128>}]} {
    %c0 = arith.constant 0 : index
    %c0_0 = arith.constant 0 : index
    %0 = vector.load %arg1[%c0, %c0_0] : memref<16x16xbf16, #tpu.memory_space<vmem>>, vector<16x16xbf16>
    %c0_1 = arith.constant 0 : index
    %c0_2 = arith.constant 0 : index
    %1 = vector.load %arg8[%c0_1, %c0_2] : memref<16x20xbf16, #tpu.memory_space<vmem>>, vector<16x16xbf16>
    tpu.vector_store %arg8[%c0_1, %c0_2], %0 {strides = array<i32>} : memref<16x20xbf16, #tpu.memory_space<vmem>>, vector<16x16xbf16>,
    %c0_3 = arith.constant 0 : index
    %c0_4 = arith.constant 0 : index
    %2 = vector.load %arg2[%c0_3, %c0_4] : memref<16x4xbf16, #tpu.memory_space<vmem>>, vector<16x4xbf16>
    %c0_5 = arith.constant 0 : index
    %c16 = arith.constant 16 : index
    %3 = vector.load %arg8[%c0_5, %c16] : memref<16x20xbf16, #tpu.memory_space<vmem>>, vector<16x4xbf16>
    tpu.vector_store %arg8[%c0_5, %c16], %2 {strides = array<i32>} : memref<16x20xbf16, #tpu.memory_space<vmem>>, vector<16x4xbf16>,
    %c0_6 = arith.constant 0 : index
    %c0_7 = arith.constant 0 : index
    %4 = vector.load %arg8[%c0_6, %c0_7] : memref<16x20xbf16, #tpu.memory_space<vmem>>, vector<16x20xbf16>
    %c0_8 = arith.constant 0 : index
    %c0_9 = arith.constant 0 : index
    %5 = vector.load %arg3[%c0_8, %c0_9] : memref<20x128xbf16, #tpu.memory_space<vmem>>, vector<20x128xbf16>
    %cst = arith.constant dense<0.000000e+00> : vector<16x128xf32>
    %6 = tpu.matmul %4, %5, %cst {dimension_numbers = #tpu.dot_dimension_numbers<[1], [0], [0], [1], [0, 0, 1, 1], [], []>} : vector<16x20xbf16>, vector<20x128xbf16>, vector<16x128xf32> -> vector<16x128xf32>
    %c0_10 = arith.constant 0 : index
    %c0_11 = arith.constant 0 : index
    %7 = vector.load %arg4[%c0_10, %c0_11] : memref<1x128xf32, #tpu.memory_space<vmem>>, vector<1x128xf32>
    %8 = vector.broadcast %7 : vector<1x128xf32> to vector<16x128xf32>
    %9 = arith.addf %6, %8 : vector<16x128xf32>
    %cst_12 = arith.constant 0.000000e+00 : f32
    %10 = vector.broadcast %cst_12 : f32 to vector<16x128xf32>
    %11 = arith.maximumf %9, %10 : vector<16x128xf32>
    %12 = arith.truncf %11 : vector<16x128xf32> to vector<16x128xbf16>
    %c0_13 = arith.constant 0 : index
    %c0_14 = arith.constant 0 : index
    %13 = vector.load %arg5[%c0_13, %c0_14] : memref<128x128xbf16, #tpu.memory_space<vmem>>, vector<128x128xbf16>
    %cst_15 = arith.constant dense<0.000000e+00> : vector<16x128xf32>
    %14 = tpu.matmul %12, %13, %cst_15 {dimension_numbers = #tpu.dot_dimension_numbers<[1], [0], [0], [1], [0, 0, 1, 1], [], []>} : vector<16x128xbf16>, vector<128x128xbf16>, vector<16x128xf32> -> vector<16x128xf32>
    %c0_16 = arith.constant 0 : index
    %c0_17 = arith.constant 0 : index
    %15 = vector.load %arg6[%c0_16, %c0_17] : memref<1x128xf32, #tpu.memory_space<vmem>>, vector<1x128xf32>
    %16 = vector.broadcast %15 : vector<1x128xf32> to vector<16x128xf32>
    %17 = arith.addf %14, %16 : vector<16x128xf32>
    %18 = arith.truncf %17 : vector<16x128xf32> to vector<16x128xbf16>
    %c0_18 = arith.constant 0 : index
    %c0_19 = arith.constant 0 : index
    %19 = vector.load %arg7[%c0_18, %c0_19] : memref<16x128xbf16, #tpu.memory_space<vmem>>, vector<16x128xbf16>
    tpu.vector_store %arg7[%c0_18, %c0_19], %18 {strides = array<i32>} : memref<16x128xbf16, #tpu.memory_space<vmem>>, vector<16x128xbf16>,
    return
  }
  func.func @transform_0(%arg0: i32) -> (i32, i32) {
    %c0_i32 = arith.constant 0 : i32
    %c0_i32_0 = arith.constant 0 : i32
    return %arg0, %c0_i32 : i32, i32
  }
  func.func @transform_1(%arg0: i32) -> (i32, i32) {
    %c0_i32 = arith.constant 0 : i32
    %c0_i32_0 = arith.constant 0 : i32
    return %arg0, %c0_i32 : i32, i32
  }
  func.func @transform_2(%arg0: i32) -> (i32, i32) {
    %c0_i32 = arith.constant 0 : i32
    %c0_i32_0 = arith.constant 0 : i32
    %c0_i32_1 = arith.constant 0 : i32
    return %c0_i32, %c0_i32_0 : i32, i32
  }
  func.func @transform_3(%arg0: i32) -> (i32, i32) {
    %c0_i32 = arith.constant 0 : i32
    %c0_i32_0 = arith.constant 0 : i32
    %c0_i32_1 = arith.constant 0 : i32
    return %c0_i32, %c0_i32_0 : i32, i32
  }
  func.func @transform_4(%arg0: i32) -> (i32, i32) {
    %c0_i32 = arith.constant 0 : i32
    %c0_i32_0 = arith.constant 0 : i32
    %c0_i32_1 = arith.constant 0 : i32
    return %c0_i32, %c0_i32_0 : i32, i32
  }
  func.func @transform_5(%arg0: i32) -> (i32, i32) {
    %c0_i32 = arith.constant 0 : i32
    %c0_i32_0 = arith.constant 0 : i32
    %c0_i32_1 = arith.constant 0 : i32
    return %c0_i32, %c0_i32_0 : i32, i32
  }
  func.func @transform_6(%arg0: i32) -> (i32, i32) {
    %c0_i32 = arith.constant 0 : i32
    %c0_i32_0 = arith.constant 0 : i32
    return %arg0, %c0_i32 : i32, i32
  }
}

</mosaic_0001>

<bundles_post_ra>
// kernel: tpu_custom_call.1
= control target key start
LH: loop header
LB: loop body
LE: loop exit
PB: predicated region body
PF: predicated region fallthrough
CT: control target
= control target key end

     0   :  { %11 = vsyncpa [#allocation4], 0  ;;  %s546_s0 = inlined_call_operand.hbm [shape: bf16[16,16], index: 0, kind: input, shape index: {}]   ;;  %s547_s1 = inlined_call_operand.vmem [shape: bf16[16,4], index: 1, kind: input, shape index: {}]   ;;  %s548_s2 = inlined_call_operand.vmem [shape: bf16[20,128], index: 2, kind: input, shape index: {}]   ;;  %s549_s3 = inlined_call_operand.vmem [shape: f32[1,128], index: 3, kind: input, shape index: {}]   ;;  %s550_s4 = inlined_call_operand.hbm [shape: bf16[128,128], index: 4, kind: input, shape index: {}]   ;;  %s551_s5 = inlined_call_operand.vmem [shape: f32[1,128], index: 5, kind: input, shape index: {}]   ;;  %s552_s6 = inlined_call_operand.hbm [shape: bf16[16,128], index: 6, kind: output, shape index: {}]  }
   0x1   :  { %12 = vsyncpa [#allocation7], 0 }
   0x2   :  { %13 = vsyncpa [#allocation5], 0  ;;  %s443_s21 = smov [#allocation3]   ;;  %s371_s25 = scalar_lea.hbm %s546_s0, 128 }
   0x3   :  { %s19_s22 = sshll.u32 %s443_s21, 4  ;;  %p372_p0 = scmp.ne.s32.totalorder %s546_s0, %s371_s25  ;;  %s20_s22 = int_to_ptr.vmem [resolvable:$true] %s19_s22 }
   0x4   :  { %p375_p1 = scmp.lt.u32.totalorder %s371_s25, %s546_s0 }
   0x6   :  { %p377_p2 = pnand %p375_p1, %p372_p0 }
   0x8   :  { %380 = shalt.err (!%p377_p2)
}
   0x9   :  { %s381_s30 = scalar_lea.vmem %s20_s22, 128  ;;  %p386_p4 = scmp.lt.s32.totalorder %s20_s22, %s20_s22 }
   0xa   :  { %p382_p3 = scmp.ne.s32.totalorder %s20_s22, %s381_s30  ;;  %p387_p5 = scmp.lt.s32.totalorder %s381_s30, %s381_s30 }
   0xc   :  { %p388_p6 = por %p387_p5, %p386_p4 }
   0xe   :  { %p389_p7 = pnand %p388_p6, %p382_p3 }
  0x10   :  { %392 = shalt.err (!%p389_p7)
}
  0x11   :  { %s444_s7 = smov 64   ;;  %s445_s8 = smov 4  }
  0x12   :  { %25 = dma.hbm_to_vmem [thread:$0]  %s546_s0, 128, %s20_s22, [#allocation4], %s444_s7, %s444_s7, %s445_s8  }
  0x13   :  { %s446_s11 = smov [#allocation6]   ;;  %s393_s15 = scalar_lea.hbm %s550_s4, 1024 }
  0x14   :  { %s37_s12 = sshll.u32 %s446_s11, 4  ;;  %p394_p8 = scmp.ne.s32.totalorder %s550_s4, %s393_s15  ;;  %s38_s12 = int_to_ptr.vmem [resolvable:$true] %s37_s12 }
  0x15   :  { %p397_p9 = scmp.lt.u32.totalorder %s393_s15, %s550_s4 }
  0x17   :  { %p399_p10 = pnand %p397_p9, %p394_p8 }
  0x19   :  { %402 = shalt.err (!%p399_p10)
}
  0x1a   :  { %s403_s20 = scalar_lea.vmem %s38_s12, 1024  ;;  %p408_p12 = scmp.lt.s32.totalorder %s38_s12, %s38_s12 }
  0x1b   :  { %p404_p11 = scmp.ne.s32.totalorder %s38_s12, %s403_s20  ;;  %p409_p13 = scmp.lt.s32.totalorder %s403_s20, %s403_s20 }
  0x1d   :  { %p410_p0 = por %p409_p13, %p408_p12 }
  0x1f   :  { %p411_p1 = pnand %p410_p0, %p404_p11 }
  0x21   :  { %414 = shalt.err (!%p411_p1)
}
  0x22   :  { %43 = dma.hbm_to_vmem [thread:$0]  %s550_s4, 1024, %s38_s12, [#allocation7], %s444_s7, %s444_s7, %s445_s8  }
  0x23   :  { %437 = dma.done.wait [#allocation4], 128  }
  0x24   :  { %438 = vsyncadd [#allocation4], 4294967168 }
  0x25   :  { %439 = dma.done.wait [#allocation7], 1024  }
  0x26   :  { %440 = vsyncadd [#allocation7], 4294966272  ;;  %v447_v0 = vmov 0.0   ;;  %vm448_vm0 = vmmov 0   ;;  %v359_v1 = vld [vmem:[%s547_s1] sm:$0xff]   ;;  %vm61_vm1 = vcmask 130048  }
  0x27   :  { %323 = vmatprep.subr.bf16.mxu0 %v447_v0  ;;  %331 = vmatprep.subr.bf16.mxu1 %v447_v0  ;;  %v360_v2 = vld [vmem:[#allocation3] sm:$0xff]   ;;  %s449_s24 = smov 16   ;;  %v361_v3 = vld [vmem:[%s548_s2] sm:$0xff]   ;;  %vm99_vm2 = vcmask 1041408   ;;  %v363_v5 = vld [vmem:[#allocation6] sm:$0xff]   ;;  %vm73_vm3 = vcmask 162944  }
  0x28   :  { %327 = vmatprep.mubr.msk.bf16.mxu0 %vm448_vm0, %v447_v0  ;;  %347 = vmatprep.mubr.msk.bf16.mxu1 %vm448_vm0, %v447_v0  ;;  %62 = vst.msk [vmem:[#allocation2] sm:$0xff] %vm61_vm1, %v360_v2  ;;  %v362_v4 = vld [vmem:[%s548_s2 + $0x8] ss:$0 sps:$4 sm:$0x33]   ;;  %v364_v7 = vld [vmem:[#allocation6 + $0x8] sm:$0xff]   ;;  %v365_v8 = vld [vmem:[#allocation6 + $0x10] sm:$0xff]  }
  0x29   :  { %70 = vrot.lane.b32.xlu0 %v359_v1, %s449_s24  ;;  %324 = vmatpush3.bf16.msra.mxu0 %v361_v3  ;;  %v101_v6 = vsel %vm99_vm2, %v362_v4, 0  ;;  %v366_v9 = vld [vmem:[#allocation6 + $0x18] sm:$0xff]   ;;  %v367_v10 = vld [vmem:[#allocation6 + $0x20] sm:$0xff]   ;;  %v368_v11 = vld [vmem:[#allocation6 + $0x28] sm:$0xff]   ;;  %vm95_vm4 = vcmask 162816   ;;  %s450_s30 = smov [#allocation8]  }
  0x2a   :  { %325 = vmatprep.subr.bf16.mxu0 %v447_v0  ;;  %332 = vmatpush3.bf16.msra.mxu1 %v363_v5  ;;  %v369_v14 = vld [vmem:[#allocation6 + $0x30] sm:$0xff]   ;;  %v370_v15 = vld [vmem:[#allocation6 + $0x38] sm:$0xff]   ;;  %s274_s9 = sshll.u32 %s450_s30, 4  ;;  %s275_s9 = int_to_ptr.vmem [resolvable:$true] %s274_s9 }
  0x2b   :  { %333 = vmatprep.subr.bf16.mxu1 %v447_v0  ;;  %v289_v16 = vld [vmem:[%s549_s3] ss:$0 sm:$0xff]  ;;  %s415_s3 = scalar_lea.vmem %s275_s9, 128  ;;  %p420_p3 = scmp.lt.s32.totalorder %s275_s9, %s275_s9 }
  0x2c   :  { %v293_v26 = vld [vmem:[%s551_s5] ss:$0 sm:$0xff]  ;;  %p416_p2 = scmp.ne.s32.totalorder %s275_s9, %s415_s3  ;;  %p421_p4 = scmp.lt.s32.totalorder %s415_s3, %s415_s3 }
  0x2d   :  { %326 = vmatpush3.bf16.msra.mxu0 %v101_v6 }
  0x2e   :  { %334 = vmatpush3.bf16.msra.mxu1 %v364_v7  ;;  %p422_p5 = por %p421_p4, %p420_p3 }
  0x2f   :  { %335 = vmatprep.subr.bf16.mxu1 %v447_v0 }
  0x30   :  { %p423_p6 = pnand %p422_p5, %p416_p2 }
  0x32   :  { %336 = vmatpush3.bf16.msra.mxu1 %v365_v8 }
  0x33   :  { %337 = vmatprep.subr.bf16.mxu1 %v447_v0 }
  0x36   :  { %338 = vmatpush3.bf16.msra.mxu1 %v366_v9 }
  0x37   :  { %339 = vmatprep.subr.bf16.mxu1 %v447_v0 }
  0x3a   :  { %340 = vmatpush3.bf16.msra.mxu1 %v367_v10 }
  0x3b   :  { %341 = vmatprep.subr.bf16.mxu1 %v447_v0 }
  0x3e   :  { %342 = vmatpush3.bf16.msra.mxu1 %v368_v11 }
  0x3f   :  { %343 = vmatprep.subr.bf16.mxu1 %v447_v0 }
  0x42   :  { %344 = vmatpush3.bf16.msra.mxu1 %v369_v14 }
  0x43   :  { %345 = vmatprep.subr.bf16.mxu1 %v447_v0 }
  0x46   :  { %346 = vmatpush3.bf16.msra.mxu1 %v370_v15 }
  0x9b   :  { %v71_v12 = vpop.permute.xlu0 %70 }
  0x9c   :  { %74 = vst.msk [vmem:[#allocation2] sm:$0xff] %vm73_vm3, %v71_v12 }
  0xa3   :  { %v75_v13 = vld [vmem:[#allocation2] sm:$0xff] }
  0xa4   :  { %328 = vmatmul.mubr.msk.bf16.vlgmr.msra.gmra.mrb[0].mxu0 %vm95_vm4, %v75_v13 }
 0x177   :  { %v137_v17 = vpop.f32.mrb[0].mxu0 }
 0x178   :  { %v138_v18 = vadd.f32 %v289_v16, %v137_v17  ;;  %v329_v19 = vpop.f32.mrb[1].mxu0 }
 0x179   :  { %v140_v20 = vpop.f32.mrb[2].mxu0 }
 0x17a   :  { %v141_v21 = vadd.f32 %v289_v16, %v140_v20  ;;  %v330_v22 = vpop.f32.mrb[3].mxu0  ;;  %v144_v23 = vmax.f32 %v138_v18, 0.0 }
 0x17c   :  { %v145_v24 = vmax.f32 %v141_v21, 0.0 }
 0x17e   :  { %v146_v25 = vpack.c.bf16 %v145_v24, %v144_v23 }
 0x180   :  { %348 = vmatmul.mubr.bf16.vlgmr.msra.gmra.mrb[0].mxu1 %v146_v25 }
 0x253   :  { %v252_v27 = vpop.f32.mrb[0].mxu1 }
 0x254   :  { %v349_v28 = vpop.f32.mrb[1].mxu1  ;;  %v253_v30 = vadd.f32 %v293_v26, %v252_v27 }
 0x255   :  { %v255_v29 = vpop.f32.mrb[2].mxu1 }
 0x256   :  { %v256_v31 = vadd.f32 %v293_v26, %v255_v29  ;;  %v350_v32 = vpop.f32.mrb[3].mxu1 }
 0x258   :  { %v309_v33 = vpack.c.bf16 %v256_v31, %v253_v30 }
 0x25a   :  { %310 = vst [vmem:[#allocation8] sm:$0xff] %v309_v33  }
 0x25b   :  { %426 = shalt.err (!%p423_p6)
}
 0x25c   :  { %s427_s11 = scalar_lea.hbm %s552_s6, 128 }
 0x25d   :  { %p428_p7 = scmp.ne.s32.totalorder %s552_s6, %s427_s11  ;;  %p431_p8 = scmp.lt.u32.totalorder %s427_s11, %s552_s6 }
 0x25f   :  { %p433_p9 = pnand %p431_p8, %p428_p7 }
 0x261   :  { %436 = shalt.err (!%p433_p9)
}
 0x262   :  { %280 = dma.vmem_to_hbm [thread:$0]  %s275_s9, 128, %s552_s6, [#allocation5], %s444_s7, %s444_s7, %s445_s8  }
 0x263   :  { %441 = dma.done.wait [#allocation5], 128  }
 0x264   :  { %442 = vsyncadd [#allocation5], 4294967168 }
 0x265   :  { %284 = vsyncpa [#allocation4], 1 }
 0x266   :  { %285 = vsyncpa [#allocation7], 1 }
 0x267   :  { %286 = vsyncpa [#allocation5], 1 }

// kernel: tpu_custom_call.1
= control target key start
LH: loop header
LB: loop body
LE: loop exit
PB: predicated region body
PF: predicated region fallthrough
CT: control target
= control target key end

     0   :  { %11 = vsyncpa [#allocation4], 0  ;;  %s546_s0 = inlined_call_operand.hbm [shape: bf16[16,16], index: 0, kind: input, shape index: {}]   ;;  %s547_s1 = inlined_call_operand.vmem [shape: bf16[16,4], index: 1, kind: input, shape index: {}]   ;;  %s548_s2 = inlined_call_operand.vmem [shape: bf16[20,128], index: 2, kind: input, shape index: {}]   ;;  %s549_s3 = inlined_call_operand.vmem [shape: f32[1,128], index: 3, kind: input, shape index: {}]   ;;  %s550_s4 = inlined_call_operand.hbm [shape: bf16[128,128], index: 4, kind: input, shape index: {}]   ;;  %s551_s5 = inlined_call_operand.vmem [shape: f32[1,128], index: 5, kind: input, shape index: {}]   ;;  %s552_s6 = inlined_call_operand.hbm [shape: bf16[16,128], index: 6, kind: output, shape index: {}]  }
   0x1   :  { %12 = vsyncpa [#allocation7], 0 }
   0x2   :  { %13 = vsyncpa [#allocation5], 0  ;;  %s443_s21 = smov [#allocation3]   ;;  %s371_s25 = scalar_lea.hbm %s546_s0, 128 }
   0x3   :  { %s19_s22 = sshll.u32 %s443_s21, 4  ;;  %p372_p0 = scmp.ne.s32.totalorder %s546_s0, %s371_s25  ;;  %s20_s22 = int_to_ptr.vmem [resolvable:$true] %s19_s22 }
   0x4   :  { %p375_p1 = scmp.lt.u32.totalorder %s371_s25, %s546_s0 }
   0x6   :  { %p377_p2 = pnand %p375_p1, %p372_p0 }
   0x8   :  { %380 = shalt.err (!%p377_p2)
}
   0x9   :  { %s381_s30 = scalar_lea.vmem %s20_s22, 128  ;;  %p386_p4 = scmp.lt.s32.totalorder %s20_s22, %s20_s22 }
   0xa   :  { %p382_p3 = scmp.ne.s32.totalorder %s20_s22, %s381_s30  ;;  %p387_p5 = scmp.lt.s32.totalorder %s381_s30, %s381_s30 }
   0xc   :  { %p388_p6 = por %p387_p5, %p386_p4 }
   0xe   :  { %p389_p7 = pnand %p388_p6, %p382_p3 }
  0x10   :  { %392 = shalt.err (!%p389_p7)
}
  0x11   :  { %s444_s7 = smov 64   ;;  %s445_s8 = smov 4  }
  0x12   :  { %25 = dma.hbm_to_vmem [thread:$0]  %s546_s0, 128, %s20_s22, [#allocation4], %s444_s7, %s444_s7, %s445_s8  }
  0x13   :  { %s446_s11 = smov [#allocation6]   ;;  %s393_s15 = scalar_lea.hbm %s550_s4, 1024 }
  0x14   :  { %s37_s12 = sshll.u32 %s446_s11, 4  ;;  %p394_p8 = scmp.ne.s32.totalorder %s550_s4, %s393_s15  ;;  %s38_s12 = int_to_ptr.vmem [resolvable:$true] %s37_s12 }
  0x15   :  { %p397_p9 = scmp.lt.u32.totalorder %s393_s15, %s550_s4 }
  0x17   :  { %p399_p10 = pnand %p397_p9, %p394_p8 }
  0x19   :  { %402 = shalt.err (!%p399_p10)
}
  0x1a   :  { %s403_s20 = scalar_lea.vmem %s38_s12, 1024  ;;  %p408_p12 = scmp.lt.s32.totalorder %s38_s12, %s38_s12 }
  0x1b   :  { %p404_p11 = scmp.ne.s32.totalorder %s38_s12, %s403_s20  ;;  %p409_p13 = scmp.lt.s32.totalorder %s403_s20, %s403_s20 }
  0x1d   :  { %p410_p0 = por %p409_p13, %p408_p12 }
  0x1f   :  { %p411_p1 = pnand %p410_p0, %p404_p11 }
  0x21   :  { %414 = shalt.err (!%p411_p1)
}
  0x22   :  { %43 = dma.hbm_to_vmem [thread:$0]  %s550_s4, 1024, %s38_s12, [#allocation7], %s444_s7, %s444_s7, %s445_s8  }
  0x23   :  { %437 = dma.done.wait [#allocation4], 128  }
  0x24   :  { %438 = vsyncadd [#allocation4], 4294967168 }
  0x25   :  { %439 = dma.done.wait [#allocation7], 1024  }
  0x26   :  { %440 = vsyncadd [#allocation7], 4294966272  ;;  %v447_v0 = vmov 0.0   ;;  %vm448_vm0 = vmmov 0   ;;  %v359_v1 = vld [vmem:[%s547_s1] sm:$0xff]   ;;  %vm61_vm1 = vcmask 130048  }
  0x27   :  { %323 = vmatprep.subr.bf16.mxu0 %v447_v0  ;;  %331 = vmatprep.subr.bf16.mxu1 %v447_v0  ;;  %v360_v2 = vld [vmem:[#allocation3] sm:$0xff]   ;;  %s449_s24 = smov 16   ;;  %v361_v3 = vld [vmem:[%s548_s2] sm:$0xff]   ;;  %vm99_vm2 = vcmask 1041408   ;;  %v363_v5 = vld [vmem:[#allocation6] sm:$0xff]   ;;  %vm73_vm3 = vcmask 162944  }
  0x28   :  { %327 = vmatprep.mubr.msk.bf16.mxu0 %vm448_vm0, %v447_v0  ;;  %347 = vmatprep.mubr.msk.bf16.mxu1 %vm448_vm0, %v447_v0  ;;  %62 = vst.msk [vmem:[#allocation2] sm:$0xff] %vm61_vm1, %v360_v2  ;;  %v362_v4 = vld [vmem:[%s548_s2 + $0x8] ss:$0 sps:$4 sm:$0x33]   ;;  %v364_v7 = vld [vmem:[#allocation6 + $0x8] sm:$0xff]   ;;  %v365_v8 = vld [vmem:[#allocation6 + $0x10] sm:$0xff]  }
  0x29   :  { %70 = vrot.lane.b32.xlu0 %v359_v1, %s449_s24  ;;  %324 = vmatpush3.bf16.msra.mxu0 %v361_v3  ;;  %v101_v6 = vsel %vm99_vm2, %v362_v4, 0  ;;  %v366_v9 = vld [vmem:[#allocation6 + $0x18] sm:$0xff]   ;;  %v367_v10 = vld [vmem:[#allocation6 + $0x20] sm:$0xff]   ;;  %v368_v11 = vld [vmem:[#allocation6 + $0x28] sm:$0xff]   ;;  %vm95_vm4 = vcmask 162816   ;;  %s450_s30 = smov [#allocation8]  }
  0x2a   :  { %325 = vmatprep.subr.bf16.mxu0 %v447_v0  ;;  %332 = vmatpush3.bf16.msra.mxu1 %v363_v5  ;;  %v369_v14 = vld [vmem:[#allocation6 + $0x30] sm:$0xff]   ;;  %v370_v15 = vld [vmem:[#allocation6 + $0x38] sm:$0xff]   ;;  %s274_s9 = sshll.u32 %s450_s30, 4  ;;  %s275_s9 = int_to_ptr.vmem [resolvable:$true] %s274_s9 }
  0x2b   :  { %333 = vmatprep.subr.bf16.mxu1 %v447_v0  ;;  %v289_v16 = vld [vmem:[%s549_s3] ss:$0 sm:$0xff]  ;;  %s415_s3 = scalar_lea.vmem %s275_s9, 128  ;;  %p420_p3 = scmp.lt.s32.totalorder %s275_s9, %s275_s9 }
  0x2c   :  { %v293_v26 = vld [vmem:[%s551_s5] ss:$0 sm:$0xff]  ;;  %p416_p2 = scmp.ne.s32.totalorder %s275_s9, %s415_s3  ;;  %p421_p4 = scmp.lt.s32.totalorder %s415_s3, %s415_s3 }
  0x2d   :  { %326 = vmatpush3.bf16.msra.mxu0 %v101_v6 }
  0x2e   :  { %334 = vmatpush3.bf16.msra.mxu1 %v364_v7  ;;  %p422_p5 = por %p421_p4, %p420_p3 }
  0x2f   :  { %335 = vmatprep.subr.bf16.mxu1 %v447_v0 }
  0x30   :  { %p423_p6 = pnand %p422_p5, %p416_p2 }
  0x32   :  { %336 = vmatpush3.bf16.msra.mxu1 %v365_v8 }
  0x33   :  { %337 = vmatprep.subr.bf16.mxu1 %v447_v0 }
  0x36   :  { %338 = vmatpush3.bf16.msra.mxu1 %v366_v9 }
  0x37   :  { %339 = vmatprep.subr.bf16.mxu1 %v447_v0 }
  0x3a   :  { %340 = vmatpush3.bf16.msra.mxu1 %v367_v10 }
  0x3b   :  { %341 = vmatprep.subr.bf16.mxu1 %v447_v0 }
  0x3e   :  { %342 = vmatpush3.bf16.msra.mxu1 %v368_v11 }
  0x3f   :  { %343 = vmatprep.subr.bf16.mxu1 %v447_v0 }
  0x42   :  { %344 = vmatpush3.bf16.msra.mxu1 %v369_v14 }
  0x43   :  { %345 = vmatprep.subr.bf16.mxu1 %v447_v0 }
  0x46   :  { %346 = vmatpush3.bf16.msra.mxu1 %v370_v15 }
  0x9b   :  { %v71_v12 = vpop.permute.xlu0 %70 }
  0x9c   :  { %74 = vst.msk [vmem:[#allocation2] sm:$0xff] %vm73_vm3, %v71_v12 }
  0xa3   :  { %v75_v13 = vld [vmem:[#allocation2] sm:$0xff] }
  0xa4   :  { %328 = vmatmul.mubr.msk.bf16.vlgmr.msra.gmra.mrb[0].mxu0 %vm95_vm4, %v75_v13 }
 0x177   :  { %v137_v17 = vpop.f32.mrb[0].mxu0 }
 0x178   :  { %v138_v18 = vadd.f32 %v289_v16, %v137_v17  ;;  %v329_v19 = vpop.f32.mrb[1].mxu0 }
 0x179   :  { %v140_v20 = vpop.f32.mrb[2].mxu0 }
 0x17a   :  { %v141_v21 = vadd.f32 %v289_v16, %v140_v20  ;;  %v330_v22 = vpop.f32.mrb[3].mxu0  ;;  %v144_v23 = vmax.f32 %v138_v18, 0.0 }
 0x17c   :  { %v145_v24 = vmax.f32 %v141_v21, 0.0 }
 0x17e   :  { %v146_v25 = vpack.c.bf16 %v145_v24, %v144_v23 }
 0x180   :  { %348 = vmatmul.mubr.bf16.vlgmr.msra.gmra.mrb[0].mxu1 %v146_v25 }
 0x253   :  { %v252_v27 = vpop.f32.mrb[0].mxu1 }
 0x254   :  { %v349_v28 = vpop.f32.mrb[1].mxu1  ;;  %v253_v30 = vadd.f32 %v293_v26, %v252_v27 }
 0x255   :  { %v255_v29 = vpop.f32.mrb[2].mxu1 }
 0x256   :  { %v256_v31 = vadd.f32 %v293_v26, %v255_v29  ;;  %v350_v32 = vpop.f32.mrb[3].mxu1 }
 0x258   :  { %v309_v33 = vpack.c.bf16 %v256_v31, %v253_v30 }
 0x25a   :  { %310 = vst [vmem:[#allocation8] sm:$0xff] %v309_v33  }
 0x25b   :  { %426 = shalt.err (!%p423_p6)
}
 0x25c   :  { %s427_s11 = scalar_lea.hbm %s552_s6, 128 }
 0x25d   :  { %p428_p7 = scmp.ne.s32.totalorder %s552_s6, %s427_s11  ;;  %p431_p8 = scmp.lt.u32.totalorder %s427_s11, %s552_s6 }
 0x25f   :  { %p433_p9 = pnand %p431_p8, %p428_p7 }
 0x261   :  { %436 = shalt.err (!%p433_p9)
}
 0x262   :  { %280 = dma.vmem_to_hbm [thread:$0]  %s275_s9, 128, %s552_s6, [#allocation5], %s444_s7, %s444_s7, %s445_s8  }
 0x263   :  { %441 = dma.done.wait [#allocation5], 128  }
 0x264   :  { %442 = vsyncadd [#allocation5], 4294967168 }
 0x265   :  { %284 = vsyncpa [#allocation4], 1 }
 0x266   :  { %285 = vsyncpa [#allocation7], 1 }
 0x267   :  { %286 = vsyncpa [#allocation5], 1 }

</bundles_post_ra>
